<compile_context>
chip_gen: v7x
topology: tpu7x:2x2x1
jax: 0.10.0
libtpu: 0.0.40
codegen_flags: <defaults>
</compile_context>

<pallas_src>
import functools

import jax
import jax.numpy as jnp
from jax.experimental import pallas as pl
from jax.experimental.pallas import tpu as pltpu


def _round_up(x, m):
    return ((x + m - 1) // m) * m


def _conv2d_kernel(x_ref, w_ref, b_ref, o_ref, *, h, kh, kw, ho, wo_p, cin,
                   cout_p, matmul_dtype):
    """One batch element of a stride-1 VALID Conv2d (+ Identity norm).

    x_ref: (H, W_pad, Cin)           VMEM   W_pad = Wo_p + Kw - 1
    w_ref: (Kh*Kw, Cin, Cout_p)      VMEM   HWIO taps, Cout zero-padded to 128
    b_ref: (1, Cout_p)               VMEM   f32
    o_ref: (Ho*Wo_p, Cout_p)         VMEM   lane-dense flat output slab
    """
    x = x_ref[...]                                  # (H, W_pad, Cin)
    if matmul_dtype is not None:
        x = x.astype(matmul_dtype)                  # single cast, before any gather

    acc = None
    for dw in range(kw):
        # One sublane shift per kernel column (tiny: Cin lanes only).
        # TODO(synk): pltpu.roll(x, -dw, axis=1) would push this shift onto the
        #             XLU slot; a static slice is kept for lowering robustness.
        x_dw = x[:, dw:dw + wo_p, :]                # (H, Wo_p, Cin)
        # Layout-free collapse: Wo_p % 16 == 0 is guaranteed by the wrapper.
        x_dw = x_dw.reshape(h * wo_p, cin)          # (H*Wo_p, Cin)
        for dh in range(kh):
            # Free row slice at a 16-aligned offset (dh * Wo_p).
            tap = x_dw[dh * wo_p:dh * wo_p + ho * wo_p, :]    # (Ho*Wo_p, Cin)
            part = jnp.dot(tap, w_ref[dh * kw + dw],
                           preferred_element_type=jnp.float32)
            acc = part if acc is None else acc + part

    acc = acc + b_ref[...]                          # broadcast (1, Cout_p)
    # norm='none' -> Identity: nothing else to do.
    o_ref[...] = acc.astype(o_ref.dtype)


def prepare_norm_conv2d_params(weight, bias, matmul_dtype=jnp.bfloat16):
    """One-time reformat of Conv2d parameters (weights are static across calls).

    weight: (Cout, Cin, Kh, Kw) torch Conv2d layout
    bias:   (Cout,)
    returns (w_taps (Kh*Kw, Cin, Cout_p), bias2d (1, Cout_p) f32)
    """
    cout, cin, kh, kw = weight.shape
    cout_p = _round_up(cout, 128)
    # OIHW -> HWIO taps flattened over (Kh, Kw); Cout zero-padded to the lane
    # width so the kernel stores full 128-lane vregs.
    w_taps = jnp.transpose(weight, (2, 3, 1, 0)).reshape(kh * kw, cin, cout)
    w_taps = jnp.pad(w_taps, ((0, 0), (0, 0), (0, cout_p - cout)))
    if matmul_dtype is not None:
        w_taps = w_taps.astype(matmul_dtype)
    b2d = jnp.pad(bias.reshape(1, cout).astype(jnp.float32),
                  ((0, 0), (0, cout_p - cout)))
    return w_taps, b2d


def norm_conv2d_nhwc(x_nhwc, w_taps, b2d, *, kh, kw, cout,
                     matmul_dtype=jnp.bfloat16):
    """Hot path: NHWC in, NHWC out (no wrapper-side transposes)."""
    n, h, w, cin = x_nhwc.shape
    ho, wo = h - kh + 1, w - kw + 1
    cout_p = w_taps.shape[-1]

    # Right-pad W so the padded output width is a multiple of 16 -> the
    # in-kernel row-collapse and dh row slices are tile-aligned for f32 & bf16.
    wo_p = _round_up(wo, 16)
    w_pad = wo_p + kw - 1
    if w_pad > w:
        x_nhwc = jnp.pad(x_nhwc, ((0, 0), (0, 0), (0, w_pad - w), (0, 0)))

    kernel = functools.partial(
        _conv2d_kernel, h=h, kh=kh, kw=kw, ho=ho, wo_p=wo_p, cin=cin,
        cout_p=cout_p, matmul_dtype=matmul_dtype)

    out_flat = pl.pallas_call(
        kernel,
        out_shape=jax.ShapeDtypeStruct((n, ho * wo_p, cout_p), x_nhwc.dtype),
        grid=(n,),                                   # real parallel axis (v7x)
        in_specs=[
            pl.BlockSpec((None, h, w_pad, cin), lambda b: (b, 0, 0, 0)),
            pl.BlockSpec((kh * kw, cin, cout_p), lambda b: (0, 0, 0)),
            pl.BlockSpec((1, cout_p), lambda b: (0, 0)),
        ],
        out_specs=pl.BlockSpec((None, ho * wo_p, cout_p), lambda b: (b, 0, 0)),
        compiler_params=pltpu.CompilerParams(
            dimension_semantics=("parallel",),
        ),
    )(x_nhwc, w_taps, b2d)

    # Drop width / Cout padding (cheap metadata reshape + small slice here;
    # see TODO(synk) above for production-scale writeback options).
    return out_flat.reshape(n, ho, wo_p, cout_p)[:, :, :wo, :cout]


def norm_conv2d(x_nchw, weight, bias, *, matmul_dtype=jnp.bfloat16):
    """NormConv2d.forward with norm='none' (Conv2d stride=1, padding=0).

    NCHW convenience wrapper matching the PyTorch module interface.  The two
    transposes are separate HBM round trips; prefer norm_conv2d_nhwc plus a
    one-time prepare_norm_conv2d_params when the surrounding model is NHWC.
    """
    cout, cin, kh, kw = weight.shape
    assert x_nchw.shape[1] == cin
    w_taps, b2d = prepare_norm_conv2d_params(weight, bias, matmul_dtype)
    x_nhwc = jnp.transpose(x_nchw, (0, 2, 3, 1))
    out_nhwc = norm_conv2d_nhwc(x_nhwc, w_taps, b2d, kh=kh, kw=kw, cout=cout,
                                matmul_dtype=matmul_dtype)
    return jnp.transpose(out_nhwc, (0, 3, 1, 2))


if __name__ == "__main__":
    # Small shapes consistent with Conv2d(in_channels=4, out_channels=8, kernel_size=3)
    N, CIN, H, W = 2, 4, 16, 16
    COUT, KH, KW = 8, 3, 3

    key = jax.random.PRNGKey(0)
    kx, kw_, kb = jax.random.split(key, 3)
    x = jax.random.normal(kx, (N, CIN, H, W), dtype=jnp.float32)
    # Deterministic kaiming-uniform-ish parameter init.
    fan_in = CIN * KH * KW
    bound = 1.0 / (fan_in ** 0.5)
    weight = jax.random.uniform(kw_, (COUT, CIN, KH, KW), dtype=jnp.float32,
                                minval=-bound, maxval=bound)
    bias = jax.random.uniform(kb, (COUT,), dtype=jnp.float32,
                              minval=-bound, maxval=bound)

    # Reference: XLA conv with torch.nn.Conv2d default semantics.
    ref = jax.lax.conv_general_dilated(
        x, weight, window_strides=(1, 1), padding="VALID",
        dimension_numbers=("NCHW", "OIHW", "NCHW"),
    ) + bias[None, :, None, None]

    # Default bf16-operand path (f32 accumulation): loosened tolerance.
    out = jax.block_until_ready(norm_conv2d(x, weight, bias))
    assert out.shape == (N, COUT, H - KH + 1, W - KW + 1), out.shape
    assert jnp.allclose(out, ref, atol=5e-2, rtol=5e-2), "bf16 path mismatch"

    # f32-operand path: tight tolerance (validates conv semantics exactly).
    out_f32 = jax.block_until_ready(norm_conv2d(x, weight, bias, matmul_dtype=None))
    assert jnp.allclose(out_f32, ref, atol=1e-4, rtol=1e-4), "f32 path mismatch"

    print("KERNEL_OK")
</pallas_src>

<mosaic_0001>
module attributes {stable_mosaic.version = 11 : i64} {
  func.func @_conv2d_kernel(%arg0: i32, %arg1: memref<1x16x18x4xf32, #tpu.memory_space<vmem>>, %arg2: memref<9x4x128xbf16, #tpu.memory_space<vmem>>, %arg3: memref<1x128xf32, #tpu.memory_space<vmem>>, %arg4: memref<1x224x128xf32, #tpu.memory_space<vmem>>) attributes {dimension_semantics = [#tpu.dimension_semantics<parallel>], iteration_bounds = array<i64: 2>, scalar_prefetch = 0 : i64, scratch_operands = 0 : i64, tpu.core_type = #tpu.core_type<tc>, window_params = [{transform_indices = @transform_0, window_bounds = array<i64: 1, 16, 18, 4>}, {pipeline_mode = #tpu.pipeline_mode<synchronous>, transform_indices = @transform_1, window_bounds = array<i64: 9, 4, 128>}, {pipeline_mode = #tpu.pipeline_mode<synchronous>, transform_indices = @transform_2, window_bounds = array<i64: 1, 128>}, {transform_indices = @transform_3, window_bounds = array<i64: 1, 224, 128>}]} {
    %c0 = arith.constant 0 : index
    %c0_0 = arith.constant 0 : index
    %c0_1 = arith.constant 0 : index
    %c0_2 = arith.constant 0 : index
    %0 = vector.load %arg1[%c0, %c0_0, %c0_1, %c0_2] : memref<1x16x18x4xf32, #tpu.memory_space<vmem>>, vector<1x16x18x4xf32>
    %1 = vector.shape_cast %0 : vector<1x16x18x4xf32> to vector<16x18x4xf32>
    %2 = arith.truncf %1 : vector<16x18x4xf32> to vector<16x18x4xbf16>
    %3 = vector.extract_strided_slice %2 {offsets = [0, 0, 0], sizes = [16, 16, 4], strides = [1, 1, 1]} : vector<16x18x4xbf16> to vector<16x16x4xbf16>
    %4 = vector.shape_cast %3 : vector<16x16x4xbf16> to vector<256x4xbf16>
    %5 = vector.extract_strided_slice %4 {offsets = [0, 0], sizes = [224, 4], strides = [1, 1]} : vector<256x4xbf16> to vector<224x4xbf16>
    %c0_3 = arith.constant 0 : index
    %c0_4 = arith.constant 0 : index
    %c0_5 = arith.constant 0 : index
    %6 = vector.load %arg2[%c0_3, %c0_4, %c0_5] : memref<9x4x128xbf16, #tpu.memory_space<vmem>>, vector<1x4x128xbf16>
    %7 = vector.shape_cast %6 : vector<1x4x128xbf16> to vector<4x128xbf16>
    %cst = arith.constant dense<0.000000e+00> : vector<224x128xf32>
    %8 = tpu.matmul %5, %7, %cst {dimension_numbers = #tpu.dot_dimension_numbers<[1], [0], [0], [1], [0, 0, 1, 1], [], []>} : vector<224x4xbf16>, vector<4x128xbf16>, vector<224x128xf32> -> vector<224x128xf32>
    %9 = vector.extract_strided_slice %4 {offsets = [16, 0], sizes = [224, 4], strides = [1, 1]} : vector<256x4xbf16> to vector<224x4xbf16>
    %c3 = arith.constant 3 : index
    %c0_6 = arith.constant 0 : index
    %c0_7 = arith.constant 0 : index
    %10 = vector.load %arg2[%c3, %c0_6, %c0_7] : memref<9x4x128xbf16, #tpu.memory_space<vmem>>, vector<1x4x128xbf16>
    %11 = vector.shape_cast %10 : vector<1x4x128xbf16> to vector<4x128xbf16>
    %cst_8 = arith.constant dense<0.000000e+00> : vector<224x128xf32>
    %12 = tpu.matmul %9, %11, %cst_8 {dimension_numbers = #tpu.dot_dimension_numbers<[1], [0], [0], [1], [0, 0, 1, 1], [], []>} : vector<224x4xbf16>, vector<4x128xbf16>, vector<224x128xf32> -> vector<224x128xf32>
    %13 = arith.addf %8, %12 : vector<224x128xf32>
    %14 = vector.extract_strided_slice %4 {offsets = [32, 0], sizes = [224, 4], strides = [1, 1]} : vector<256x4xbf16> to vector<224x4xbf16>
    %c6 = arith.constant 6 : index
    %c0_9 = arith.constant 0 : index
    %c0_10 = arith.constant 0 : index
    %15 = vector.load %arg2[%c6, %c0_9, %c0_10] : memref<9x4x128xbf16, #tpu.memory_space<vmem>>, vector<1x4x128xbf16>
    %16 = vector.shape_cast %15 : vector<1x4x128xbf16> to vector<4x128xbf16>
    %cst_11 = arith.constant dense<0.000000e+00> : vector<224x128xf32>
    %17 = tpu.matmul %14, %16, %cst_11 {dimension_numbers = #tpu.dot_dimension_numbers<[1], [0], [0], [1], [0, 0, 1, 1], [], []>} : vector<224x4xbf16>, vector<4x128xbf16>, vector<224x128xf32> -> vector<224x128xf32>
    %18 = arith.addf %13, %17 : vector<224x128xf32>
    %19 = vector.extract_strided_slice %2 {offsets = [0, 1, 0], sizes = [16, 16, 4], strides = [1, 1, 1]} : vector<16x18x4xbf16> to vector<16x16x4xbf16>
    %20 = vector.shape_cast %19 : vector<16x16x4xbf16> to vector<256x4xbf16>
    %21 = vector.extract_strided_slice %20 {offsets = [0, 0], sizes = [224, 4], strides = [1, 1]} : vector<256x4xbf16> to vector<224x4xbf16>
    %c1 = arith.constant 1 : index
    %c0_12 = arith.constant 0 : index
    %c0_13 = arith.constant 0 : index
    %22 = vector.load %arg2[%c1, %c0_12, %c0_13] : memref<9x4x128xbf16, #tpu.memory_space<vmem>>, vector<1x4x128xbf16>
    %23 = vector.shape_cast %22 : vector<1x4x128xbf16> to vector<4x128xbf16>
    %cst_14 = arith.constant dense<0.000000e+00> : vector<224x128xf32>
    %24 = tpu.matmul %21, %23, %cst_14 {dimension_numbers = #tpu.dot_dimension_numbers<[1], [0], [0], [1], [0, 0, 1, 1], [], []>} : vector<224x4xbf16>, vector<4x128xbf16>, vector<224x128xf32> -> vector<224x128xf32>
    %25 = arith.addf %18, %24 : vector<224x128xf32>
    %26 = vector.extract_strided_slice %20 {offsets = [16, 0], sizes = [224, 4], strides = [1, 1]} : vector<256x4xbf16> to vector<224x4xbf16>
    %c4 = arith.constant 4 : index
    %c0_15 = arith.constant 0 : index
    %c0_16 = arith.constant 0 : index
    %27 = vector.load %arg2[%c4, %c0_15, %c0_16] : memref<9x4x128xbf16, #tpu.memory_space<vmem>>, vector<1x4x128xbf16>
    %28 = vector.shape_cast %27 : vector<1x4x128xbf16> to vector<4x128xbf16>
    %cst_17 = arith.constant dense<0.000000e+00> : vector<224x128xf32>
    %29 = tpu.matmul %26, %28, %cst_17 {dimension_numbers = #tpu.dot_dimension_numbers<[1], [0], [0], [1], [0, 0, 1, 1], [], []>} : vector<224x4xbf16>, vector<4x128xbf16>, vector<224x128xf32> -> vector<224x128xf32>
    %30 = arith.addf %25, %29 : vector<224x128xf32>
    %31 = vector.extract_strided_slice %20 {offsets = [32, 0], sizes = [224, 4], strides = [1, 1]} : vector<256x4xbf16> to vector<224x4xbf16>
    %c7 = arith.constant 7 : index
    %c0_18 = arith.constant 0 : index
    %c0_19 = arith.constant 0 : index
    %32 = vector.load %arg2[%c7, %c0_18, %c0_19] : memref<9x4x128xbf16, #tpu.memory_space<vmem>>, vector<1x4x128xbf16>
    %33 = vector.shape_cast %32 : vector<1x4x128xbf16> to vector<4x128xbf16>
    %cst_20 = arith.constant dense<0.000000e+00> : vector<224x128xf32>
    %34 = tpu.matmul %31, %33, %cst_20 {dimension_numbers = #tpu.dot_dimension_numbers<[1], [0], [0], [1], [0, 0, 1, 1], [], []>} : vector<224x4xbf16>, vector<4x128xbf16>, vector<224x128xf32> -> vector<224x128xf32>
    %35 = arith.addf %30, %34 : vector<224x128xf32>
    %36 = vector.extract_strided_slice %2 {offsets = [0, 2, 0], sizes = [16, 16, 4], strides = [1, 1, 1]} : vector<16x18x4xbf16> to vector<16x16x4xbf16>
    %37 = vector.shape_cast %36 : vector<16x16x4xbf16> to vector<256x4xbf16>
    %38 = vector.extract_strided_slice %37 {offsets = [0, 0], sizes = [224, 4], strides = [1, 1]} : vector<256x4xbf16> to vector<224x4xbf16>
    %c2 = arith.constant 2 : index
    %c0_21 = arith.constant 0 : index
    %c0_22 = arith.constant 0 : index
    %39 = vector.load %arg2[%c2, %c0_21, %c0_22] : memref<9x4x128xbf16, #tpu.memory_space<vmem>>, vector<1x4x128xbf16>
    %40 = vector.shape_cast %39 : vector<1x4x128xbf16> to vector<4x128xbf16>
    %cst_23 = arith.constant dense<0.000000e+00> : vector<224x128xf32>
    %41 = tpu.matmul %38, %40, %cst_23 {dimension_numbers = #tpu.dot_dimension_numbers<[1], [0], [0], [1], [0, 0, 1, 1], [], []>} : vector<224x4xbf16>, vector<4x128xbf16>, vector<224x128xf32> -> vector<224x128xf32>
    %42 = arith.addf %35, %41 : vector<224x128xf32>
    %43 = vector.extract_strided_slice %37 {offsets = [16, 0], sizes = [224, 4], strides = [1, 1]} : vector<256x4xbf16> to vector<224x4xbf16>
    %c5 = arith.constant 5 : index
    %c0_24 = arith.constant 0 : index
    %c0_25 = arith.constant 0 : index
    %44 = vector.load %arg2[%c5, %c0_24, %c0_25] : memref<9x4x128xbf16, #tpu.memory_space<vmem>>, vector<1x4x128xbf16>
    %45 = vector.shape_cast %44 : vector<1x4x128xbf16> to vector<4x128xbf16>
    %cst_26 = arith.constant dense<0.000000e+00> : vector<224x128xf32>
    %46 = tpu.matmul %43, %45, %cst_26 {dimension_numbers = #tpu.dot_dimension_numbers<[1], [0], [0], [1], [0, 0, 1, 1], [], []>} : vector<224x4xbf16>, vector<4x128xbf16>, vector<224x128xf32> -> vector<224x128xf32>
    %47 = arith.addf %42, %46 : vector<224x128xf32>
    %48 = vector.extract_strided_slice %37 {offsets = [32, 0], sizes = [224, 4], strides = [1, 1]} : vector<256x4xbf16> to vector<224x4xbf16>
    %c8 = arith.constant 8 : index
    %c0_27 = arith.constant 0 : index
    %c0_28 = arith.constant 0 : index
    %49 = vector.load %arg2[%c8, %c0_27, %c0_28] : memref<9x4x128xbf16, #tpu.memory_space<vmem>>, vector<1x4x128xbf16>
    %50 = vector.shape_cast %49 : vector<1x4x128xbf16> to vector<4x128xbf16>
    %cst_29 = arith.constant dense<0.000000e+00> : vector<224x128xf32>
    %51 = tpu.matmul %48, %50, %cst_29 {dimension_numbers = #tpu.dot_dimension_numbers<[1], [0], [0], [1], [0, 0, 1, 1], [], []>} : vector<224x4xbf16>, vector<4x128xbf16>, vector<224x128xf32> -> vector<224x128xf32>
    %52 = arith.addf %47, %51 : vector<224x128xf32>
    %c0_30 = arith.constant 0 : index
    %c0_31 = arith.constant 0 : index
    %53 = vector.load %arg3[%c0_30, %c0_31] : memref<1x128xf32, #tpu.memory_space<vmem>>, vector<1x128xf32>
    %54 = vector.broadcast %53 : vector<1x128xf32> to vector<224x128xf32>
    %55 = arith.addf %52, %54 : vector<224x128xf32>
    %c0_32 = arith.constant 0 : index
    %c0_33 = arith.constant 0 : index
    %c0_34 = arith.constant 0 : index
    %56 = vector.load %arg4[%c0_32, %c0_33, %c0_34] : memref<1x224x128xf32, #tpu.memory_space<vmem>>, vector<1x224x128xf32>
    %57 = vector.shape_cast %56 : vector<1x224x128xf32> to vector<224x128xf32>
    %58 = vector.shape_cast %55 : vector<224x128xf32> to vector<1x224x128xf32>
    tpu.vector_store %arg4[%c0_32, %c0_33, %c0_34], %58 {strides = array<i32>} : memref<1x224x128xf32, #tpu.memory_space<vmem>>, vector<1x224x128xf32>,
    return
  }
  func.func @transform_0(%arg0: i32) -> (i32, i32, i32, i32) {
    %c0_i32 = arith.constant 0 : i32
    %c0_i32_0 = arith.constant 0 : i32
    %c0_i32_1 = arith.constant 0 : i32
    %c0_i32_2 = arith.constant 0 : i32
    return %arg0, %c0_i32, %c0_i32_0, %c0_i32_1 : i32, i32, i32, i32
  }
  func.func @transform_1(%arg0: i32) -> (i32, i32, i32) {
    %c0_i32 = arith.constant 0 : i32
    %c0_i32_0 = arith.constant 0 : i32
    %c0_i32_1 = arith.constant 0 : i32
    %c0_i32_2 = arith.constant 0 : i32
    return %c0_i32, %c0_i32_0, %c0_i32_1 : i32, i32, i32
  }
  func.func @transform_2(%arg0: i32) -> (i32, i32) {
    %c0_i32 = arith.constant 0 : i32
    %c0_i32_0 = arith.constant 0 : i32
    %c0_i32_1 = arith.constant 0 : i32
    return %c0_i32, %c0_i32_0 : i32, i32
  }
  func.func @transform_3(%arg0: i32) -> (i32, i32, i32) {
    %c0_i32 = arith.constant 0 : i32
    %c0_i32_0 = arith.constant 0 : i32
    %c0_i32_1 = arith.constant 0 : i32
    return %arg0, %c0_i32, %c0_i32_0 : i32, i32, i32
  }
}

</mosaic_0001>

<bundles_post_ra>
// kernel: tpu_custom_call.1
= control target key start
LH: loop header
LB: loop body
LE: loop exit
PB: predicated region body
PF: predicated region fallthrough
CT: control target
= control target key end

     0   :  { %8 = vsyncpa [#allocation3], 0  ;;  %s4032_s0 = inlined_call_operand.vmem [shape: f32[2,16,18,4], index: 0, kind: input, shape index: {}]   ;;  %s4033_s1 = inlined_call_operand.vmem [shape: bf16[9,4,128], index: 1, kind: input, shape index: {}]   ;;  %s4034_s2 = inlined_call_operand.vmem [shape: f32[1,128], index: 2, kind: input, shape index: {}]   ;;  %s4035_s3 = inlined_call_operand.hbm [shape: f32[2,224,128], index: 3, kind: output, shape index: {}]  }
   0x1   :  { %10 = vsyncpa [#allocation3 + $0x1], 0  ;;  %s3253_s12 = smov 0   ;;  %s3255_s13 = smov 0  }
   0x2   :  { %s3257_s14 = smov 0   ;;  %s3259_s15 = smov 0  }
   0x3 LB: > { %s3274_s16 = sadd.s32 4294967295, %s3228_s15   ;;  %s2338_s17 = sadd.s32 4294967294, %s3228_s15   ;;  %s3228_s15 = sphi %s3259_s15, %s4041_s15   ;;  %s3224_s14 = sphi %s3257_s14, %s4040_s14   ;;  %s3220_s13 = sphi %s3255_s13, %s4039_s13   ;;  %s3216_s12 = sphi %s3253_s12, %s4038_s12  }
   0x4   : > { %s3278_s18 = sadd.s32 1, %s3228_s15   ;;  %s91_s19 = sadd.s32 1, %s3224_s14 }
   0x5   : > { %s88_s20 = ssub.s32 %s3228_s15, %s3278_s18  ;;  %p101_p0 = scmp.ne.s32.totalorder %s3224_s14, %s3220_s13 }
   0x6   : > { %p89_p1 = scmp.eq.s32.totalorder %s88_s20, 0  ;;  %p102_p2 = scmp.eq.s32.totalorder %s3274_s16, 1 }
   0x7   : > { %p107_p3 = scmp.ne.s32.totalorder %s3220_s13, %s3216_s12  ;;  %p108_p4 = scmp.eq.s32.totalorder %s2338_s17, 1 }
   0x8   : > { %s3289_s21 = scalar_select %p89_p1, %s3224_s14, %s91_s19  }
   0x9   : > { %p3291_p5 = por %p102_p2, %p101_p0  ;;  %p3295_p6 = por %p108_p4, %p107_p3 }
   0xa   : > { %p2341_p7 = scmp.ge.s32.totalorder %s3228_s15, 1  ;;  %p140_p8 = scmp.lt.s32.totalorder %s3228_s15, 3 }
   0xc   : > { %p141_p9 = pnand %p2341_p7, %p140_p8 }
   0xd   : > { %v2343_v0 = vld [vmem:[%s4033_s1 + $0x6] sm:$0x3] (!%p141_p9)  ;;  %vm296_vm0 = vcmask (!%p141_p9), 1041408   ;;  %p164_p10 = scmp.lt.s32.totalorder (!%p141_p9), %s3274_s16, 1  ;;  %v3310_v2 = vld [vmem:[%s4033_s1 + $0x8] sm:$0x3] (!%p141_p9) }
   0xe   : > { %144 = sbr.rel (%p141_p9) target bundleno = 519 (0x207), region = 32  ;;  %3112 = vmatprep.subr.msk.bf16.mxu1 (!%p141_p9), %vm296_vm0, %v2343_v0  ;;  %v298_v1 = vsel (!%p141_p9), %vm296_vm0, %v2343_v0, 0  ;;  %3116 = vmatprep.subr.msk.bf16.mxu0 (!%p141_p9), %vm296_vm0, %v3310_v2  ;;  %v3317_v3 = vsel (!%p141_p9), %vm296_vm0, %v3310_v2, 0  ;;  %v2417_v4 = vld [vmem:[%s4033_s1 + $0xe] sm:$0x3] (!%p141_p9)  ;;  %vm253_vm1 = vcmask (!%p141_p9), 31744  }
   0xf   : > { %2617 = vmatpush3.bf16.msra.mxu1 (!%p141_p9), %v298_v1  ;;  %v250_v5 = vld [vmem:[%s4033_s1] sm:$0x3] (!%p141_p9)  ;;  %2737 = vmatpush3.bf16.msra.mxu0 (!%p141_p9), %v3317_v3  ;;  %vm777_vm2 = vsmask.f32 (!%p141_p9), 7424  ;;  %v3344_v13 = vld [vmem:[%s4033_s1 + $0xc] sm:$0x3] (!%p141_p9) }
  0x10   : > { %3113 = vmatprep.subr.msk.bf16.mxu1 (!%p141_p9), %vm296_vm0, %v250_v5  ;;  %3118 = vmatprep.subr.msk.bf16.mxu0 (!%p141_p9), %vm296_vm0, %v2417_v4  ;;  %v449_v19 = vsel (!%p141_p9), %vm296_vm0, %v250_v5, 0  ;;  %v1361_v29 = vsel (!%p141_p9), %vm296_vm0, %v2417_v4, 0  ;;  %v3413_v63 = vld [vmem:[%s4033_s1 + $0x4] sm:$0x3] (!%p141_p9)  ;;  %vm1568_vm3 = vcmask (!%p141_p9), 1046528   ;;  %s161_s29 = sand.u32 (!%p141_p9), 1, %s3220_s13  }
  0x11   : > { %s3122_s30 = smul.u32 (!%p141_p9), 224, %s161_s29  ;;  %s3991_s11 = scalar_lea.sflag (!%p141_p9), [#allocation3], %s161_s29 }
  0x12   : > { %s3124_s7 = smul.u32 (!%p141_p9), 3584, %s3274_s16  ;;  %s3230_s19 = smov (!%p141_p9), [#allocation2]  }
  0x13   : > { %s3170_s20 = sshll.u32 (!%p141_p9), %s3230_s19, 4  ;;  %s3171_s20 = int_to_ptr.vmem [resolvable:$false] %s3170_s20 }
  0x14   : > { %s3172_s24 = scalar_lea.vmem (!%p141_p9), %s3171_s20, 7168 }
  0x15   : > { %s165_s28 = scalar_select %p164_p10, %s3274_s16, 1 }
  0x16   : > { %s3981_s16 = scalar_lea.hbm %s4035_s3, %s3124_s7 }
  0x17   : > { %s3123_s6 = smul.u32 384, %s165_s28 }
  0x19   : > { %s3331_s9 = scalar_lea.vmem %s4032_s0, %s3123_s6  ;;  %s3921_s6 = scalar_lea.vmem [#allocation2], %s3122_s30 }
  0x1a   : > { %v173_v6 = vld [vmem:[%s3331_s9 + $0x18] sm:$0xff]  ;;  %v174_v7 = vld [vmem:[%s3331_s9 + $0x20] sm:$0xff]  ;;  %v176_v8 = vld [vmem:[%s3331_s9 + $0x30] sm:$0xff]  ;;  %s2276_s8 = sshll.u32 %s3921_s6, 4  ;;  %s3983_s8 = int_to_ptr.vmem [resolvable:$true] %s2276_s8 }
  0x1b   : > { %v3336_v9 = vpack.c.bf16 %v174_v7, %v173_v6  ;;  %v177_v10 = vld [vmem:[%s3331_s9 + $0x38] sm:$0xff]  ;;  %v175_v11 = vld [vmem:[%s3331_s9 + $0x28] sm:$0x3]  ;;  %v180_v16 = vld [vmem:[%s3331_s9 + $0x50] sm:$0xff]  ;;  %s3166_s17 = scalar_lea.vmem %s3983_s8, 3584  ;;  %p3173_p0 = scmp.lt.s32.totalorder %s3983_s8, %s3171_s20 }
  0x1c   : > { %v179_v12 = vld [vmem:[%s3331_s9 + $0x48] sm:$0xff]  ;;  %v3346_v14 = vpack.c.bf16 %v177_v10, %v176_v8  ;;  %v3348_v15 = vpack.c.bf16 %v175_v11, %v175_v11  ;;  %v178_v17 = vld [vmem:[%s3331_s9 + $0x40] sm:$0x3]  ;;  %v181_v25 = vld [vmem:[%s3331_s9 + $0x58] sm:$0x3]  ;;  %p3167_p11 = scmp.ne.s32.totalorder %s3983_s8, %s3166_s17  ;;  %p3174_p1 = scmp.lt.s32.totalorder %s3172_s24, %s3166_s17 }
  0x1d   : > { %v182_v18 = vld [vmem:[%s3331_s9 + $0x60] sm:$0xff]  ;;  %2618 = vmatprep.mubr.msk.bf16.mxu1 %vm253_vm1, %v3336_v9  ;;  %v789_v20 = vshrl.u32 %v3336_v9, 16  ;;  %v791_v21 = vshll.u32 %v3336_v9, 16  ;;  %v3358_v22 = vpack.c.bf16 %v180_v16, %v179_v12  ;;  %v3360_v23 = vpack.c.bf16 %v178_v17, %v178_v17  ;;  %v183_v24 = vld [vmem:[%s3331_s9 + $0x68] sm:$0xff]  ;;  %v185_v30 = vld [vmem:[%s3331_s9 + $0x78] sm:$0xff] }
  0x1e   : > { %2619 = vmatmul.mubr.msk.bf16.vlgmr.msra.gmra.mrb[0].mxu1 %vm253_vm1, %v3346_v14  ;;  %v796_v26 = vshll.u32 %v3348_v15, 16  ;;  %v800_v27 = vshrl.u32 %v3346_v14, 16  ;;  %v802_v28 = vshll.u32 %v3346_v14, 16  ;;  %v186_v31 = vld [vmem:[%s3331_s9 + $0x80] sm:$0xff]  ;;  %v3375_v34 = vpack.c.bf16 %v183_v24, %v182_v18  ;;  %v184_v36 = vld [vmem:[%s3331_s9 + $0x70] sm:$0x3]  ;;  %p3168_p12 = pnand %p3167_p11, %p3291_p5  ;;  %p3175_p2 = por %p3174_p1, %p3173_p0 }
  0x1f   : > { %v793_v32 = vrot.slane %v791_v21, 1  ;;  %2622 = vmatprep.mubr.msk.bf16.mxu1 %vm253_vm1, %v3358_v22  ;;  %v807_v33 = vshll.u32 %v3360_v23, 16  ;;  %v3377_v35 = vpack.c.bf16 %v181_v25, %v181_v25  ;;  %2647 = vmatpush3.bf16.msra.mxu1 %v449_v19  ;;  %v811_v39 = vshrl.u32 %v3358_v22, 16  ;;  %v188_v41 = vld [vmem:[%s3331_s9 + $0x90] sm:$0xff]  ;;  %v189_v42 = vld [vmem:[%s3331_s9 + $0x98] sm:$0xff]  ;;  %v191_v52 = vld [vmem:[%s3331_s9 + $0xa8] sm:$0xff] }
  0x20   : > { %v798_v37 = vrot.slane %v796_v26, 1  ;;  %v804_v38 = vrot.slane %v802_v28, 1  ;;  %v813_v40 = vshll.u32 %v3358_v22, 16  ;;  %3114 = vmatprep.subr.msk.bf16.mxu1 %vm296_vm0, %v3344_v13  ;;  %v3387_v46 = vpack.c.bf16 %v186_v31, %v185_v30  ;;  %v187_v47 = vld [vmem:[%s3331_s9 + $0x88] sm:$0x3]  ;;  %v192_v53 = vld [vmem:[%s3331_s9 + $0xb0] sm:$0xff]  ;;  %p3169_p13 = pneg %p3168_p12 }
  0x21   : > { %v794_v43 = vor.u32 %v793_v32, %v789_v20  ;;  %v809_v44 = vrot.slane %v807_v33, 1  ;;  %v818_v45 = vshll.u32 %v3377_v35, 16  ;;  %v3390_v50 = vpack.c.bf16 %v184_v36, %v184_v36  ;;  %v190_v58 = vld [vmem:[%s3331_s9 + $0xa0] sm:$0x3]  ;;  %v193_v6 = vld [vmem:[%s3331_s9 + $0xb8] sm:$0x3] }
  0x22   : > { %v805_v48 = vor.u32 %v804_v38, %v800_v27  ;;  %v815_v49 = vrot.slane %v813_v40, 1  ;;  %v822_v51 = vshrl.u32 %v3375_v34, 16  ;;  %v824_v56 = vshll.u32 %v3375_v34, 16  ;;  %v194_v18 = vld [vmem:[%s3331_s9 + $0xc0] sm:$0xff]  ;;  %v195_v19 = vld [vmem:[%s3331_s9 + $0xc8] sm:$0xff]  ;;  %v197_v38 = vld [vmem:[%s3331_s9 + $0xd8] sm:$0xff]  ;;  %p3176_p3 = pnand %p3175_p2, %p3169_p13 }
  0x23   : > { %v3396_v54 = vsel %vm777_vm2, %v794_v43, %v798_v37  ;;  %v820_v55 = vrot.slane %v818_v45, 1  ;;  %v3399_v57 = vpack.c.bf16 %v189_v42, %v188_v41  ;;  %v829_v61 = vshll.u32 %v3390_v50, 16  ;;  %v196_v36 = vld [vmem:[%s3331_s9 + $0xd0] sm:$0x3] }
  0x24   : > { %2738 = vmatprep.mubr.msk.bf16.mxu0 %vm253_vm1, %v3396_v54  ;;  %v3405_v59 = vsel %vm777_vm2, %v805_v48, %v809_v44  ;;  %v816_v60 = vor.u32 %v815_v49, %v811_v39  ;;  %v3408_v62 = vpack.c.bf16 %v187_v47, %v187_v47  ;;  %v826_v0 = vrot.slane %v824_v56, 1  ;;  %v198_v39 = vld [vmem:[%s3331_s9 + $0xe0] sm:$0xff]  ;;  %v203_v44 = vld [vmem:[%s3331_s9 + $0x108] sm:$0xff]  ;;  %v204_v45 = vld [vmem:[%s3331_s9 + $0x110] sm:$0xff] }
  0x25   : > { %2739 = vmatmul.mubr.msk.bf16.vlgmr.msra.gmra.mrb[0].mxu0 %vm253_vm1, %v3405_v59  ;;  %v833_v1 = vshrl.u32 %v3387_v46, 16  ;;  %v835_v4 = vshll.u32 %v3387_v46, 16  ;;  %v3419_v5 = vpack.c.bf16 %v192_v53, %v191_v52  ;;  %v831_v8 = vrot.slane %v829_v61, 1  ;;  %v205_v47 = vld [vmem:[%s3331_s9 + $0x118] sm:$0x3]  ;;  %v207_v52 = vld [vmem:[%s3331_s9 + $0x128] sm:$0xff] }
  0x26   : > { %2767 = vmatpush3.bf16.msra.mxu0 %v1361_v29  ;;  %2623 = vmatmul.mubr.msk.bf16.gmra.mrb[4].mxu1 %vm253_vm1, %v3375_v34  ;;  %v3425_v7 = vsel %vm777_vm2, %v816_v60, %v820_v55  ;;  %v840_v10 = vshll.u32 %v3408_v62, 16  ;;  %v3428_v11 = vpack.c.bf16 %v190_v58, %v190_v58  ;;  %v827_v12 = vor.u32 %v826_v0, %v822_v51  ;;  %v206_v51 = vld [vmem:[%s3331_s9 + $0x120] sm:$0xff]  ;;  %v209_v53 = vld [vmem:[%s3331_s9 + $0x138] sm:$0xff]  ;;  %v212_v61 = vld [vmem:[%s3331_s9 + $0x150] sm:$0xff] }
  0x27   : > { %2742 = vmatprep.mubr.msk.bf16.mxu0 %vm253_vm1, %v3425_v7  ;;  %2626 = vmatprep.mubr.msk.bf16.mxu1 %vm253_vm1, %v3387_v46  ;;  %v837_v16 = vrot.slane %v835_v4, 1  ;;  %v846_v17 = vshll.u32 %v3399_v57, 16  ;;  %v3437_v21 = vpack.c.bf16 %v193_v6, %v193_v6  ;;  %v844_v25 = vshrl.u32 %v3399_v57, 16  ;;  %v210_v55 = vld [vmem:[%s3331_s9 + $0x140] sm:$0xff]  ;;  %v213_v0 = vld [vmem:[%s3331_s9 + $0x158] sm:$0xff] }
  0x28   : > { %v842_v20 = vrot.slane %v840_v10, 1  ;;  %3119 = vmatprep.subr.msk.bf16.mxu0 %vm296_vm0, %v3413_v63  ;;  %v851_v26 = vshll.u32 %v3428_v11, 16  ;;  %v3444_v27 = vsel %vm777_vm2, %v827_v12, %v831_v8  ;;  %v3446_v29 = vpack.c.bf16 %v195_v19, %v194_v18  ;;  %v208_v4 = vld [vmem:[%s3331_s9 + $0x130] sm:$0x3] }
  0x29   : > { %v838_v24 = vor.u32 %v837_v16, %v833_v1  ;;  %v848_v28 = vrot.slane %v846_v17, 1  ;;  %v857_v30 = vshll.u32 %v3419_v5, 16  ;;  %v855_v32 = vshrl.u32 %v3419_v5, 16 }
  0x2a   : > { %v862_v33 = vshll.u32 %v3437_v21, 16  ;;  %v853_v41 = vrot.slane %v851_v26, 1  ;;  %v3463_v42 = vpack.c.bf16 %v196_v36, %v196_v36  ;;  %v868_v43 = vshll.u32 %v3446_v29, 16  ;;  %v214_v36 = vld [vmem:[%s3331_s9 + $0x160] sm:$0x3] }
  0x2b   : > { %v3450_v31 = vsel %vm777_vm2, %v838_v24, %v842_v20  ;;  %v859_v37 = vrot.slane %v857_v30, 1  ;;  %v849_v40 = vor.u32 %v848_v28, %v844_v25  ;;  %v3475_v56 = vpack.c.bf16 %v198_v39, %v197_v38  ;;  %v211_v20 = vld [vmem:[%s3331_s9 + $0x148] sm:$0x3] }
  0x2c   : > { %v864_v49 = vrot.slane %v862_v33, 1  ;;  %v866_v58 = vshrl.u32 %v3446_v29, 16  ;;  %v3478_v60 = vpack.c.bf16 %v204_v45, %v203_v44  ;;  %v3482_v1 = vpack.c.bf16 %v205_v47, %v205_v47 }
  0x2d   : > { %2743 = vmatmul.mubr.msk.bf16.gmra.mrb[4].mxu0 %vm253_vm1, %v3444_v27  ;;  %v860_v48 = vor.u32 %v859_v37, %v855_v32  ;;  %v3486_v6 = vsel %vm777_vm2, %v849_v40, %v853_v41  ;;  %v870_v8 = vrot.slane %v868_v43, 1  ;;  %v873_v10 = vshll.u32 %v3463_v42, 16  ;;  %v200_v41 = vld [vmem:[%s3331_s9 + $0xf0] sm:$0xff]  ;;  %v201_v43 = vld [vmem:[%s3331_s9 + $0xf8] sm:$0xff] }
  0x2e   : > { %2627 = vmatmul.mubr.msk.bf16.gmra.mrb[8].mxu1 %vm253_vm1, %v3399_v57  ;;  %2746 = vmatprep.mubr.msk.bf16.mxu0 %vm253_vm1, %v3450_v31  ;;  %v3489_v12 = vpack.c.bf16 %v207_v52, %v206_v51  ;;  %v899_v17 = vshrl.u32 %v3478_v60, 16  ;;  %v901_v18 = vshll.u32 %v3478_v60, 16  ;;  %v906_v19 = vshll.u32 %v3482_v1, 16 }
  0x2f   : > { %2630 = vmatprep.mubr.msk.bf16.mxu1 %vm253_vm1, %v3419_v5  ;;  %v3492_v16 = vsel %vm777_vm2, %v860_v48, %v864_v49  ;;  %v3498_v24 = vpack.c.bf16 %v210_v55, %v209_v53  ;;  %v3500_v25 = vpack.c.bf16 %v213_v0, %v212_v61  ;;  %v3502_v26 = vpack.c.bf16 %v208_v4, %v208_v4 }
  0x30   : > { %v903_v28 = vrot.slane %v901_v18, 1  ;;  %v908_v30 = vrot.slane %v906_v19, 1  ;;  %v910_v32 = vshrl.u32 %v3489_v12, 16  ;;  %v912_v33 = vshll.u32 %v3489_v12, 16 }
  0x31   : > { %v871_v37 = vor.u32 %v870_v8, %v866_v58  ;;  %v875_v38 = vrot.slane %v873_v10, 1  ;;  %v917_v39 = vshll.u32 %v3502_v26, 16  ;;  %v3514_v40 = vpack.c.bf16 %v211_v20, %v211_v20 }
  0x32   : > { %v904_v44 = vor.u32 %v903_v28, %v899_v17  ;;  %v914_v45 = vrot.slane %v912_v33, 1  ;;  %v921_v47 = vshrl.u32 %v3498_v24, 16  ;;  %v923_v48 = vshll.u32 %v3498_v24, 16 }
  0x33   : > { %v919_v49 = vrot.slane %v917_v39, 1  ;;  %v928_v51 = vshll.u32 %v3514_v40, 16  ;;  %v3523_v52 = vpack.c.bf16 %v214_v36, %v214_v36  ;;  %v932_v53 = vshrl.u32 %v3500_v25, 16  ;;  %v170_v39 = vld [vmem:[%s3331_s9] sm:$0xff] }
  0x34   : > { %v3527_v55 = vsel %vm777_vm2, %v904_v44, %v908_v30  ;;  %v915_v58 = vor.u32 %v914_v45, %v910_v32  ;;  %v925_v61 = vrot.slane %v923_v48, 1  ;;  %v934_v0 = vshll.u32 %v3500_v25, 16  ;;  %v3568_v44 = vld [vmem:[%s4033_s1 + $0xa] sm:$0x3] }
  0x35   : > { %2747 = vmatmul.mubr.msk.bf16.gmra.mrb[8].mxu0 %vm253_vm1, %v3486_v6  ;;  %v3531_v4 = vsel %vm777_vm2, %v871_v37, %v875_v38  ;;  %v3533_v8 = vpack.c.bf16 %v201_v43, %v200_v41  ;;  %v930_v10 = vrot.slane %v928_v51, 1  ;;  %v939_v17 = vshll.u32 %v3523_v52, 16  ;;  %v171_v41 = vld [vmem:[%s3331_s9 + $0x8] sm:$0xff]  ;;  %v172_v43 = vld [vmem:[%s3331_s9 + $0x10] sm:$0x3] }
  0x36   : > { %2631 = vmatmul.mubr.msk.bf16.gmra.mrb[12].mxu1 %vm253_vm1, %v3446_v29  ;;  %2750 = vmatprep.mubr.msk.bf16.mxu0 %vm253_vm1, %v3492_v16  ;;  %v3537_v18 = vsel %vm777_vm2, %v915_v58, %v919_v49  ;;  %v926_v19 = vor.u32 %v925_v61, %v921_v47  ;;  %v936_v20 = vrot.slane %v934_v0, 1  ;;  %v1573_v28 = vrot.slane %v3348_v15, 1  ;;  %v199_v51 = vld [vmem:[%s3331_s9 + $0xe8] sm:$0x3]  ;;  %v202_v61 = vld [vmem:[%s3331_s9 + $0x100] sm:$0x3] }
  0x37   : > { %2634 = vmatprep.mubr.msk.bf16.mxu1 %vm253_vm1, %v3475_v56  ;;  %v941_v30 = vrot.slane %v939_v17, 1  ;;  %v1572_v36 = vrot.slane %v3336_v9, 1  ;;  %v1662_v38 = vsel %vm296_vm0, %v3413_v63, 0  ;;  %v3576_v63 = vpack.c.bf16 %v171_v41, %v170_v39 }
  0x38   : > { %v3543_v32 = vsel %vm777_vm2, %v926_v19, %v930_v10  ;;  %v937_v33 = vor.u32 %v936_v20, %v932_v53  ;;  %v3578_v45 = vpack.c.bf16 %v172_v43, %v172_v43  ;;  %v3593_v10 = vpack.c.bf16 %v199_v51, %v199_v51 }
  0x39   : > { %v3556_v37 = vsel %vm1568_vm3, %v1572_v36, %v1573_v28  ;;  %v778_v47 = vshrl.u32 %v3576_v63, 16  ;;  %v780_v48 = vshll.u32 %v3576_v63, 16  ;;  %v879_v17 = vshll.u32 %v3475_v56, 16 }
  0x3a   : > { %v3553_v15 = vsel %vm777_vm2, %v937_v33, %v941_v30  ;;  %v785_v49 = vshll.u32 %v3578_v45, 16  ;;  %v3598_v19 = vpack.c.bf16 %v202_v61, %v202_v61  ;;  %v890_v20 = vshll.u32 %v3533_v8, 16  ;;  %v216_v61 = vld [vmem:[%s3331_s9 + $0x170] sm:$0xff] }
  0x3b   : > { %v782_v53 = vrot.slane %v780_v48, 1  ;;  %v877_v30 = vshrl.u32 %v3475_v56, 16  ;;  %v881_v33 = vrot.slane %v879_v17, 1  ;;  %v884_v36 = vshll.u32 %v3593_v10, 16  ;;  %v217_v17 = vld [vmem:[%s3331_s9 + $0x178] sm:$0x3] }
  0x3c   : > { %v787_v58 = vrot.slane %v785_v49, 1  ;;  %v892_v39 = vrot.slane %v890_v20, 1  ;;  %v895_v41 = vshll.u32 %v3598_v19, 16  ;;  %v602_v43 = vsel %vm296_vm0, %v3344_v13, 0 }
  0x3d   : > { %2751 = vmatmul.mubr.msk.bf16.gmra.mrb[12].mxu0 %vm253_vm1, %v3531_v4  ;;  %v783_v0 = vor.u32 %v782_v53, %v778_v47  ;;  %v3615_v47 = vld [vmem:[%s4033_s1 + $0x2] sm:$0x3]  ;;  %v882_v48 = vor.u32 %v881_v33, %v877_v30  ;;  %v886_v49 = vrot.slane %v884_v36, 1  ;;  %v3650_v20 = vpack.c.bf16 %v217_v17, %v217_v17 }
  0x3e   : > { %2635 = vmatmul.mubr.msk.bf16.gmra.mrb[16].mxu1 %vm253_vm1, %v3533_v8  ;;  %2768 = vmatprep.mubr.msk.bf16.mxu0 %vm253_vm1, %v3405_v59  ;;  %v897_v51 = vrot.slane %v895_v41, 1  ;;  %v1579_v17 = vrot.slane %v3377_v35, 1  ;;  %v1584_v35 = vrot.slane %v3387_v46, 1 }
  0x3f   : > { %2638 = vmatprep.mubr.msk.bf16.mxu1 %vm253_vm1, %v3478_v60  ;;  %v3602_v28 = vsel %vm777_vm2, %v783_v0, %v787_v58  ;;  %v3626_v53 = vsel %vm777_vm2, %v882_v48, %v886_v49  ;;  %v215_v58 = vld [vmem:[%s3331_s9 + $0x168] sm:$0xff]  ;;  %v1570_v48 = vrot.slane %v3578_v45, 1  ;;  %v1843_v45 = vsel %vm296_vm0, %v3568_v44, 0 }
  0x40   : > { %v3641_v0 = vpack.c.bf16 %v216_v61, %v215_v58  ;;  %v3687_v61 = vld [vmem:[%s4033_s1 + $0x10] sm:$0x3] }
  0x42   : > { %v945_v30 = vshll.u32 %v3641_v0, 16  ;;  %v943_v33 = vshrl.u32 %v3641_v0, 16 }
  0x44   : > { %v947_v36 = vrot.slane %v945_v30, 1  ;;  %v1582_v30 = vrot.slane %v3390_v50, 1  ;;  %v1585_v50 = vrot.slane %v3408_v62, 1  ;;  %v1591_v62 = vrot.slane %v3437_v21, 1 }
  0x45   : > { %2769 = vmatmul.mubr.msk.bf16.vlgmr.msra.gmra.mrb[0].mxu0 %vm253_vm1, %v3425_v7  ;;  %v1597_v21 = vrot.slane %v3593_v10, 1  ;;  %v1605_v10 = vrot.slane %v3489_v12, 1 }
  0x46   : > { %2797 = vmatpush3.bf16.msra.mxu0 %v1662_v38  ;;  %2639 = vmatmul.mubr.msk.bf16.gmra.mrb[20].mxu1 %vm253_vm1, %v3489_v12  ;;  %v888_v38 = vshrl.u32 %v3533_v8, 16 }
  0x47   : > { %2772 = vmatprep.mubr.msk.bf16.mxu0 %vm253_vm1, %v3444_v27  ;;  %2642 = vmatprep.mubr.msk.bf16.mxu1 %vm253_vm1, %v3498_v24 }
  0x48   : > { %3120 = vmatprep.subr.msk.bf16.mxu0 %vm296_vm0, %v3568_v44  ;;  %v893_v13 = vor.u32 %v892_v39, %v888_v38  ;;  %v950_v38 = vshll.u32 %v3650_v20, 16  ;;  %v948_v39 = vor.u32 %v947_v36, %v943_v33  ;;  %v1581_v44 = vrot.slane %v3375_v34, 1 }
  0x4a   : > { %v952_v41 = vrot.slane %v950_v38, 1  ;;  %v3705_v36 = vsel %vm1568_vm3, %v1581_v44, %v1582_v30  ;;  %v1587_v38 = vrot.slane %v3399_v57, 1 }
  0x4c   : > { %v953_v49 = vsel %vm777_vm2, %v948_v39, %v952_v41  ;;  %v1588_v39 = vrot.slane %v3428_v11, 1  ;;  %v3720_v41 = vsel %vm1568_vm3, %v1584_v35, %v1585_v50  ;;  %v1593_v11 = vrot.slane %v3446_v29, 1 }
  0x4d   : > { %2773 = vmatmul.mubr.msk.bf16.gmra.mrb[4].mxu0 %vm253_vm1, %v3450_v31 }
  0x4e   : > { %2643 = vmatmul.mubr.msk.bf16.gmra.mrb[24].mxu1 %vm253_vm1, %v3500_v25  ;;  %2776 = vmatprep.mubr.msk.bf16.mxu0 %vm253_vm1, %v3486_v6 }
  0x4f   : > { %2648 = vmatprep.mubr.msk.bf16.mxu1 %vm253_vm1, %v3576_v63 }
  0x55   : > { %2777 = vmatmul.mubr.msk.bf16.gmra.mrb[8].mxu0 %vm253_vm1, %v3492_v16 }
  0x56   : > { %2649 = vmatmul.mubr.msk.bf16.vlgmr.msra.gmra.mrb[0].mxu1 %vm253_vm1, %v3336_v9  ;;  %2780 = vmatprep.mubr.msk.bf16.mxu0 %vm253_vm1, %v3531_v4  ;;  %v3629_v9 = vsel %vm777_vm2, %v893_v13, %v897_v51  ;;  %v1575_v51 = vrot.slane %v3346_v14, 1 }
  0x57   : > { %2652 = vmatprep.mubr.msk.bf16.mxu1 %vm253_vm1, %v3346_v14  ;;  %2677 = vmatpush3.bf16.msra.mxu1 %v602_v43  ;;  %v1569_v43 = vrot.slane %v3576_v63, 1  ;;  %v1576_v63 = vrot.slane %v3360_v23, 1  ;;  %v1578_v23 = vrot.slane %v3358_v22, 1 }
  0x58   : > { %3115 = vmatprep.subr.msk.bf16.mxu1 %vm296_vm0, %v3615_v47 }
  0x59   : > { %v1571_v13 = vsel %vm1568_vm3, %v1569_v43, %v1570_v48  ;;  %v3680_v58 = vsel %vm1568_vm3, %v1575_v51, %v1576_v63  ;;  %v3702_v33 = vsel %vm1568_vm3, %v1578_v23, %v1579_v17  ;;  %v3723_v43 = vsel %vm1568_vm3, %v1587_v38, %v1588_v39 }
  0x5a   : > { %v999_v48 = vsel %vm296_vm0, %v3615_v47, 0  ;;  %v1594_v47 = vrot.slane %v3463_v42, 1  ;;  %v1600_v42 = vrot.slane %v3598_v19, 1  ;;  %v1606_v19 = vrot.slane %v3502_v26, 1 }
  0x5d   : > { %2781 = vmatmul.mubr.msk.bf16.gmra.mrb[12].mxu0 %vm253_vm1, %v3626_v53 }
  0x5e   : > { %2653 = vmatmul.mubr.msk.bf16.gmra.mrb[4].mxu1 %vm253_vm1, %v3358_v22  ;;  %2784 = vmatprep.mubr.msk.bf16.mxu0 %vm253_vm1, %v3629_v9 }
  0x5f   : > { %2656 = vmatprep.mubr.msk.bf16.mxu1 %vm253_vm1, %v3375_v34 }
  0x65   : > { %2785 = vmatmul.mubr.msk.bf16.gmra.mrb[16].mxu0 %vm253_vm1, %v3527_v55 }
  0x66   : > { %2657 = vmatmul.mubr.msk.bf16.gmra.mrb[8].mxu1 %vm253_vm1, %v3387_v46  ;;  %2788 = vmatprep.mubr.msk.bf16.mxu0 %vm253_vm1, %v3537_v18 }
  0x67   : > { %2660 = vmatprep.mubr.msk.bf16.mxu1 %vm253_vm1, %v3399_v57 }
  0x6d   : > { %2789 = vmatmul.mubr.msk.bf16.gmra.mrb[20].mxu0 %vm253_vm1, %v3543_v32 }
  0x6e   : > { %2661 = vmatmul.mubr.msk.bf16.gmra.mrb[12].mxu1 %vm253_vm1, %v3419_v5  ;;  %2792 = vmatprep.mubr.msk.bf16.mxu0 %vm253_vm1, %v3553_v15 }
  0x6f   : > { %2664 = vmatprep.mubr.msk.bf16.mxu1 %vm253_vm1, %v3446_v29 }
  0x75   : > { %2793 = vmatmul.mubr.msk.bf16.gmra.mrb[24].mxu0 %vm253_vm1, %v953_v49  ;;  %v3745_v49 = vsel %vm1568_vm3, %v1593_v11, %v1594_v47 }
  0x76   : > { %2665 = vmatmul.mubr.msk.bf16.gmra.mrb[16].mxu1 %vm253_vm1, %v3475_v56  ;;  %2798 = vmatprep.mubr.msk.bf16.mxu0 %vm253_vm1, %v1571_v13 }
  0x77   : > { %2668 = vmatprep.mubr.msk.bf16.mxu1 %vm253_vm1, %v3533_v8 }
  0x7d   : > { %2799 = vmatmul.mubr.msk.bf16.vlgmr.msra.gmra.mrb[0].mxu0 %vm253_vm1, %v3556_v37 }
  0x7e   : > { %2827 = vmatpush3.bf16.msra.mxu0 %v1843_v45  ;;  %2669 = vmatmul.mubr.msk.bf16.gmra.mrb[20].mxu1 %vm253_vm1, %v3478_v60  ;;  %v3781_v45 = vsel %vm1568_vm3, %v1605_v10, %v1606_v19 }
  0x7f   : > { %2802 = vmatprep.mubr.msk.bf16.mxu0 %vm253_vm1, %v3680_v58  ;;  %2672 = vmatprep.mubr.msk.bf16.mxu1 %vm253_vm1, %v3489_v12 }
  0x80   : > { %3121 = vmatprep.subr.msk.bf16.mxu0 %vm296_vm0, %v3687_v61 }
  0x85   : > { %2803 = vmatmul.mubr.msk.bf16.gmra.mrb[4].mxu0 %vm253_vm1, %v3702_v33 }
  0x86   : > { %2673 = vmatmul.mubr.msk.bf16.gmra.mrb[24].mxu1 %vm253_vm1, %v3498_v24  ;;  %2806 = vmatprep.mubr.msk.bf16.mxu0 %vm253_vm1, %v3705_v36 }
  0x87   : > { %2678 = vmatprep.mubr.msk.bf16.mxu1 %vm253_vm1, %v3346_v14  ;;  %v1590_v14 = vrot.slane %v3419_v5, 1 }
  0x8d   : > { %2807 = vmatmul.mubr.msk.bf16.gmra.mrb[8].mxu0 %vm253_vm1, %v3720_v41 }
  0x8e   : > { %2679 = vmatmul.mubr.msk.bf16.vlgmr.msra.gmra.mrb[0].mxu1 %vm253_vm1, %v3358_v22  ;;  %2810 = vmatprep.mubr.msk.bf16.mxu0 %vm253_vm1, %v3723_v43  ;;  %v3742_v22 = vsel %vm1568_vm3, %v1590_v14, %v1591_v62 }
  0x8f   : > { %2682 = vmatprep.mubr.msk.bf16.mxu1 %vm253_vm1, %v3375_v34  ;;  %2707 = vmatpush3.bf16.msra.mxu1 %v999_v48  ;;  %v1596_v34 = vrot.slane %v3475_v56, 1 }
  0x90   : > { %3117 = vmatprep.subr.msk.bf16.mxu1 %vm296_vm0, %v3310_v2  ;;  %v1599_v2 = vrot.slane %v3533_v8, 1 }
  0x91   : > { %v3760_v13 = vsel %vm1568_vm3, %v1596_v34, %v1597_v21 }
  0x92   : > { %v3763_v51 = vsel %vm1568_vm3, %v1599_v2, %v1600_v42 }
  0x95   : > { %2811 = vmatmul.mubr.msk.bf16.gmra.mrb[12].mxu0 %vm253_vm1, %v3742_v22 }
  0x96   : > { %2683 = vmatmul.mubr.msk.bf16.gmra.mrb[4].mxu1 %vm253_vm1, %v3387_v46  ;;  %2814 = vmatprep.mubr.msk.bf16.mxu0 %vm253_vm1, %v3745_v49  ;;  %v1602_v46 = vrot.slane %v3478_v60, 1 }
  0x97   : > { %2686 = vmatprep.mubr.msk.bf16.mxu1 %vm253_vm1, %v3399_v57  ;;  %v1603_v57 = vrot.slane %v3482_v1, 1 }
  0x99   : > { %v3778_v63 = vsel %vm1568_vm3, %v1602_v46, %v1603_v57 }
  0x9d   : > { %2815 = vmatmul.mubr.msk.bf16.gmra.mrb[16].mxu0 %vm253_vm1, %v3760_v13 }
  0x9e   : > { %2687 = vmatmul.mubr.msk.bf16.gmra.mrb[8].mxu1 %vm253_vm1, %v3419_v5  ;;  %2818 = vmatprep.mubr.msk.bf16.mxu0 %vm253_vm1, %v3763_v51  ;;  %v1608_v5 = vrot.slane %v3498_v24, 1 }
  0x9f   : > { %2690 = vmatprep.mubr.msk.bf16.mxu1 %vm253_vm1, %v3446_v29  ;;  %v1609_v29 = vrot.slane %v3514_v40, 1 }
  0xa1   : > { %v1610_v1 = vsel %vm1568_vm3, %v1608_v5, %v1609_v29 }
  0xa5   : > { %2819 = vmatmul.mubr.msk.bf16.gmra.mrb[20].mxu0 %vm253_vm1, %v3778_v63 }
  0xa6   : > { %2691 = vmatmul.mubr.msk.bf16.gmra.mrb[12].mxu1 %vm253_vm1, %v3475_v56  ;;  %2822 = vmatprep.mubr.msk.bf16.mxu0 %vm253_vm1, %v3781_v45  ;;  %v2024_v56 = vsel %vm296_vm0, %v3687_v61, 0 }
  0xa7   : > { %2694 = vmatprep.mubr.msk.bf16.mxu1 %vm253_vm1, %v3533_v8 }
  0xad   : > { %2823 = vmatmul.mubr.msk.bf16.gmra.mrb[24].mxu0 %vm253_vm1, %v1610_v1 }
  0xae   : > { %2695 = vmatmul.mubr.msk.bf16.gmra.mrb[16].mxu1 %vm253_vm1, %v3478_v60  ;;  %2828 = vmatprep.mubr.msk.bf16.mxu0 %vm253_vm1, %v3556_v37 }
  0xaf   : > { %2698 = vmatprep.mubr.msk.bf16.mxu1 %vm253_vm1, %v3489_v12 }
  0xb5   : > { %2829 = vmatmul.mubr.msk.bf16.vlgmr.msra.gmra.mrb[0].mxu0 %vm253_vm1, %v3680_v58 }
  0xb6   : > { %2857 = vmatpush3.bf16.msra.mxu0 %v2024_v56  ;;  %2699 = vmatmul.mubr.msk.bf16.gmra.mrb[20].mxu1 %vm253_vm1, %v3498_v24 }
  0xb7   : > { %2832 = vmatprep.mubr.msk.bf16.mxu0 %vm253_vm1, %v3702_v33  ;;  %2702 = vmatprep.mubr.msk.bf16.mxu1 %vm253_vm1, %v3500_v25 }
  0xbd   : > { %2833 = vmatmul.mubr.msk.bf16.gmra.mrb[4].mxu0 %vm253_vm1, %v3705_v36 }
  0xbe   : > { %2703 = vmatmul.mubr.msk.bf16.gmra.mrb[24].mxu1 %vm253_vm1, %v3641_v0  ;;  %2836 = vmatprep.mubr.msk.bf16.mxu0 %vm253_vm1, %v3720_v41 }
  0xbf   : > { %2708 = vmatprep.mubr.msk.bf16.mxu1 %vm253_vm1, %v3602_v28 }
  0xc5   : > { %2837 = vmatmul.mubr.msk.bf16.gmra.mrb[8].mxu0 %vm253_vm1, %v3723_v43 }
  0xc6   : > { %2709 = vmatmul.mubr.msk.bf16.vlgmr.msra.gmra.mrb[0].mxu1 %vm253_vm1, %v3396_v54  ;;  %2840 = vmatprep.mubr.msk.bf16.mxu0 %vm253_vm1, %v3742_v22  ;;  %v1612_v54 = vrot.slane %v3523_v52, 1 }
  0xc7   : > { %2712 = vmatprep.mubr.msk.bf16.mxu1 %vm253_vm1, %v3405_v59  ;;  %2887 = vmatpush3.bf16.msra.mxu1 %v3317_v3  ;;  %v1611_v3 = vrot.slane %v3500_v25, 1 }
  0xc9   : > { %v1613_v59 = vsel %vm1568_vm3, %v1611_v3, %v1612_v54 }
  0xcd   : > { %2841 = vmatmul.mubr.msk.bf16.gmra.mrb[12].mxu0 %vm253_vm1, %v3745_v49 }
  0xce   : > { %2713 = vmatmul.mubr.msk.bf16.gmra.mrb[4].mxu1 %vm253_vm1, %v3425_v7  ;;  %2844 = vmatprep.mubr.msk.bf16.mxu0 %vm253_vm1, %v3760_v13  ;;  %v1614_v7 = vrot.slane %v3641_v0, 1 }
  0xcf   : > { %2716 = vmatprep.mubr.msk.bf16.mxu1 %vm253_vm1, %v3444_v27  ;;  %v1615_v27 = vrot.slane %v3650_v20, 1 }
  0xd5   : > { %2845 = vmatmul.mubr.msk.bf16.gmra.mrb[16].mxu0 %vm253_vm1, %v3763_v51 }
  0xd6   : > { %2717 = vmatmul.mubr.msk.bf16.gmra.mrb[8].mxu1 %vm253_vm1, %v3450_v31  ;;  %2848 = vmatprep.mubr.msk.bf16.mxu0 %vm253_vm1, %v3778_v63  ;;  %v1616_v31 = vsel %vm1568_vm3, %v1614_v7, %v1615_v27 }
  0xd7   : > { %2720 = vmatprep.mubr.msk.bf16.mxu1 %vm253_vm1, %v3486_v6 }
  0xdd   : > { %2849 = vmatmul.mubr.msk.bf16.gmra.mrb[20].mxu0 %vm253_vm1, %v3781_v45 }
  0xde   : > { %2721 = vmatmul.mubr.msk.bf16.gmra.mrb[12].mxu1 %vm253_vm1, %v3492_v16  ;;  %2852 = vmatprep.mubr.msk.bf16.mxu0 %vm253_vm1, %v1610_v1 }
  0xdf   : > { %2724 = vmatprep.mubr.msk.bf16.mxu1 %vm253_vm1, %v3531_v4 }
  0xe5   : > { %2853 = vmatmul.mubr.msk.bf16.gmra.mrb[24].mxu0 %vm253_vm1, %v1613_v59 }
  0xe6   : > { %2725 = vmatmul.mubr.msk.bf16.gmra.mrb[16].mxu1 %vm253_vm1, %v3626_v53  ;;  %2858 = vmatprep.mubr.msk.bf16.mxu0 %vm253_vm1, %v3680_v58 }
  0xe7   : > { %2728 = vmatprep.mubr.msk.bf16.mxu1 %vm253_vm1, %v3629_v9 }
  0xed   : > { %2859 = vmatmul.mubr.msk.bf16.vlgmr.msra.gmra.mrb[0].mxu0 %vm253_vm1, %v3702_v33 }
  0xee   : > { %2729 = vmatmul.mubr.msk.bf16.gmra.mrb[20].mxu1 %vm253_vm1, %v3527_v55  ;;  %2862 = vmatprep.mubr.msk.bf16.mxu0 %vm253_vm1, %v3705_v36 }
  0xef   : > { %2732 = vmatprep.mubr.msk.bf16.mxu1 %vm253_vm1, %v3537_v18 }
  0xf5   : > { %2863 = vmatmul.mubr.msk.bf16.gmra.mrb[4].mxu0 %vm253_vm1, %v3720_v41 }
  0xf6   : > { %2733 = vmatmul.mubr.msk.bf16.gmra.mrb[24].mxu1 %vm253_vm1, %v3543_v32  ;;  %2866 = vmatprep.mubr.msk.bf16.mxu0 %vm253_vm1, %v3723_v43 }
  0xf7   : > { %2754 = vmatprep.mubr.msk.bf16.mxu1 %vm253_vm1, %v3626_v53  ;;  %v3917_v53 = vld [vmem:[%s4034_s2] ss:$0 sm:$0xff] }
  0xfd   : > { %2867 = vmatmul.mubr.msk.bf16.gmra.mrb[8].mxu0 %vm253_vm1, %v3742_v22 }
  0xfe   : > { %2755 = vmatmul.mubr.msk.bf16.vlgmr.msra.gmra.mrb[16].mxu1 %vm253_vm1, %v3629_v9  ;;  %2870 = vmatprep.mubr.msk.bf16.mxu0 %vm253_vm1, %v3745_v49 }
  0xff   : > { %2758 = vmatprep.mubr.msk.bf16.mxu1 %vm253_vm1, %v3527_v55 }
 0x105   : > { %2871 = vmatmul.mubr.msk.bf16.gmra.mrb[12].mxu0 %vm253_vm1, %v3760_v13 }
 0x106   : > { %2759 = vmatmul.mubr.msk.bf16.gmra.mrb[20].mxu1 %vm253_vm1, %v3537_v18  ;;  %2874 = vmatprep.mubr.msk.bf16.mxu0 %vm253_vm1, %v3763_v51 }
 0x107   : > { %2762 = vmatprep.mubr.msk.bf16.mxu1 %vm253_vm1, %v3543_v32 }
 0x10d   : > { %2875 = vmatmul.mubr.msk.bf16.gmra.mrb[16].mxu0 %vm253_vm1, %v3778_v63 }
 0x10e   : > { %2763 = vmatmul.mubr.msk.bf16.gmra.mrb[24].mxu1 %vm253_vm1, %v3553_v15  ;;  %2878 = vmatprep.mubr.msk.bf16.mxu0 %vm253_vm1, %v3781_v45 }
 0x115   : > { %2879 = vmatmul.mubr.msk.bf16.gmra.mrb[20].mxu0 %vm253_vm1, %v1610_v1 }
 0x116   : > { %2882 = vmatprep.mubr.msk.bf16.mxu0 %vm253_vm1, %v1613_v59 }
 0x11d   : > { %2883 = vmatmul.mubr.msk.bf16.gmra.mrb[24].mxu0 %vm253_vm1, %v1616_v31 }
 0x199   : > { %v2710_v60 = vpop.f32.mrb[0].mxu1 }
 0x19a   : > { %v1035_v6 = vpop.f32.mrb[1].mxu1 }
 0x19b   : > { %v2711_v12 = vpop.f32.mrb[2].mxu1 }
 0x19c   : > { %v1038_v16 = vpop.f32.mrb[3].mxu1 }
 0x1a1   : > { %v2714_v24 = vpop.f32.mrb[4].mxu1 }
 0x1a2   : > { %v1051_v25 = vpop.f32.mrb[5].mxu1 }
 0x1a3   : > { %v2715_v26 = vpop.f32.mrb[6].mxu1 }
 0x1a4   : > { %v1054_v40 = vpop.f32.mrb[7].mxu1 }
 0x1a9   : > { %v2718_v52 = vpop.f32.mrb[8].mxu1 }
 0x1aa   : > { %v1067_v55 = vpop.f32.mrb[9].mxu1 }
 0x1ab   : > { %v2719_v4 = vpop.f32.mrb[10].mxu1 }
 0x1ac   : > { %v1070_v8 = vpop.f32.mrb[11].mxu1 }
 0x1b1   : > { %v2722_v18 = vpop.f32.mrb[12].mxu1 }
 0x1b2   : > { %v3905_v32 = vpop.f32.mrb[13].mxu1 }
 0x1b3   : > { %v3907_v15 = vpop.f32.mrb[14].mxu1 }
 0x1b4   : > { %v3909_v37 = vpop.f32.mrb[15].mxu1 }
 0x1c0   : > { %v2860_v28 = vpop.f32.mrb[0].mxu0 }
 0x1c1   : > { %v2888_v9 = vadd.f32 %v2860_v28, %v2710_v60  ;;  %v2060_v0 = vpop.f32.mrb[1].mxu0 }
 0x1c2   : > { %v2889_v20 = vadd.f32 %v2060_v0, %v1035_v6  ;;  %v2861_v58 = vpop.f32.mrb[2].mxu0 }
 0x1c3   : > { %v2208_v61 = vadd.f32 %v2888_v9, %v3917_v53  ;;  %v2890_v23 = vadd.f32 %v2861_v58, %v2711_v12  ;;  %v2063_v17 = vpop.f32.mrb[3].mxu0 }
 0x1c4   : > { %v2206_v44 = vadd.f32 %v2889_v20, %v3917_v53  ;;  %v2891_v30 = vadd.f32 %v2063_v17, %v1038_v16 }
 0x1c5   : > { %2236 = vst [vmem:[%s3921_s6 + $0x10] sm:$0xff] %v2208_v61  ;;  %v2209_v33 = vadd.f32 %v2890_v23, %v3917_v53 }
 0x1c6   : > { %2234 = vst [vmem:[%s3921_s6] sm:$0xff] %v2206_v44  ;;  %v2207_v36 = vadd.f32 %v2891_v30, %v3917_v53 }
 0x1c7   : > { %2237 = vst [vmem:[%s3921_s6 + $0x18] sm:$0xff] %v2209_v33 }
 0x1c8   : > { %2235 = vst [vmem:[%s3921_s6 + $0x8] sm:$0xff] %v2207_v36  ;;  %v2864_v35 = vpop.f32.mrb[4].mxu0 }
 0x1c9   : > { %v2892_v50 = vadd.f32 %v2864_v35, %v2714_v24  ;;  %v2076_v38 = vpop.f32.mrb[5].mxu0 }
 0x1ca   : > { %v2893_v39 = vadd.f32 %v2076_v38, %v1051_v25  ;;  %v2865_v41 = vpop.f32.mrb[6].mxu0 }
 0x1cb   : > { %v2212_v43 = vadd.f32 %v2892_v50, %v3917_v53  ;;  %v2894_v48 = vadd.f32 %v2865_v41, %v2715_v26  ;;  %v2079_v14 = vpop.f32.mrb[7].mxu0 }
 0x1cc   : > { %v2210_v62 = vadd.f32 %v2893_v39, %v3917_v53  ;;  %v2895_v11 = vadd.f32 %v2079_v14, %v1054_v40 }
 0x1cd   : > { %2240 = vst [vmem:[%s3921_s6 + $0x30] sm:$0xff] %v2212_v43  ;;  %v2213_v47 = vadd.f32 %v2894_v48, %v3917_v53 }
 0x1ce   : > { %2238 = vst [vmem:[%s3921_s6 + $0x20] sm:$0xff] %v2210_v62  ;;  %v2211_v22 = vadd.f32 %v2895_v11, %v3917_v53 }
 0x1cf   : > { %2241 = vst [vmem:[%s3921_s6 + $0x38] sm:$0xff] %v2213_v47 }
 0x1d0   : > { %2239 = vst [vmem:[%s3921_s6 + $0x28] sm:$0xff] %v2211_v22  ;;  %v2868_v49 = vpop.f32.mrb[8].mxu0 }
 0x1d1   : > { %v2896_v34 = vadd.f32 %v2868_v49, %v2718_v52  ;;  %v2756_v21 = vpop.f32.mrb[16].mxu1  ;;  %v2092_v2 = vpop.f32.mrb[9].mxu0 }
 0x1d2   : > { %v2897_v42 = vadd.f32 %v2092_v2, %v1067_v55  ;;  %v1280_v13 = vpop.f32.mrb[17].mxu1  ;;  %v2869_v51 = vpop.f32.mrb[10].mxu0 }
 0x1d3   : > { %v2216_v46 = vadd.f32 %v2896_v34, %v3917_v53  ;;  %v2898_v57 = vadd.f32 %v2869_v51, %v2719_v4  ;;  %v2757_v10 = vpop.f32.mrb[18].mxu1  ;;  %v2095_v19 = vpop.f32.mrb[11].mxu0 }
 0x1d4   : > { %v2214_v63 = vadd.f32 %v2897_v42, %v3917_v53  ;;  %v2899_v45 = vadd.f32 %v2095_v19, %v1070_v8  ;;  %v1283_v5 = vpop.f32.mrb[19].mxu1 }
 0x1d5   : > { %2244 = vst [vmem:[%s3921_s6 + $0x50] sm:$0xff] %v2216_v46  ;;  %v2217_v29 = vadd.f32 %v2898_v57, %v3917_v53 }
 0x1d6   : > { %2242 = vst [vmem:[%s3921_s6 + $0x40] sm:$0xff] %v2214_v63  ;;  %v2215_v1 = vadd.f32 %v2899_v45, %v3917_v53 }
 0x1d7   : > { %2245 = vst [vmem:[%s3921_s6 + $0x58] sm:$0xff] %v2217_v29 }
 0x1d8   : > { %2243 = vst [vmem:[%s3921_s6 + $0x48] sm:$0xff] %v2215_v1  ;;  %v2872_v56 = vpop.f32.mrb[12].mxu0 }
 0x1d9   : > { %v2900_v3 = vadd.f32 %v2872_v56, %v2722_v18  ;;  %v2760_v54 = vpop.f32.mrb[20].mxu1  ;;  %v2108_v59 = vpop.f32.mrb[13].mxu0 }
 0x1da   : > { %v2901_v7 = vadd.f32 %v2108_v59, %v3905_v32  ;;  %v1296_v27 = vpop.f32.mrb[21].mxu1  ;;  %v2873_v31 = vpop.f32.mrb[14].mxu0 }
 0x1db   : > { %v2220_v60 = vadd.f32 %v2900_v3, %v3917_v53  ;;  %v2902_v6 = vadd.f32 %v2873_v31, %v3907_v15  ;;  %v2761_v12 = vpop.f32.mrb[22].mxu1  ;;  %v2111_v16 = vpop.f32.mrb[15].mxu0 }
 0x1dc   : > { %v2218_v24 = vadd.f32 %v2901_v7, %v3917_v53  ;;  %v2903_v25 = vadd.f32 %v2111_v16, %v3909_v37  ;;  %v1299_v26 = vpop.f32.mrb[23].mxu1 }
 0x1dd   : > { %2248 = vst [vmem:[%s3921_s6 + $0x70] sm:$0xff] %v2220_v60  ;;  %v2221_v40 = vadd.f32 %v2902_v6, %v3917_v53 }
 0x1de   : > { %2246 = vst [vmem:[%s3921_s6 + $0x60] sm:$0xff] %v2218_v24  ;;  %v2219_v52 = vadd.f32 %v2903_v25, %v3917_v53 }
 0x1df   : > { %2249 = vst [vmem:[%s3921_s6 + $0x78] sm:$0xff] %v2221_v40 }
 0x1e0   : > { %2247 = vst [vmem:[%s3921_s6 + $0x68] sm:$0xff] %v2219_v52  ;;  %v2876_v55 = vpop.f32.mrb[16].mxu0 }
 0x1e1   : > { %v2904_v4 = vadd.f32 %v2876_v55, %v2756_v21  ;;  %v2764_v8 = vpop.f32.mrb[24].mxu1  ;;  %v2124_v18 = vpop.f32.mrb[17].mxu0 }
 0x1e2   : > { %v2905_v32 = vadd.f32 %v2124_v18, %v1280_v13  ;;  %v1312_v15 = vpop.f32.mrb[25].mxu1  ;;  %v2877_v37 = vpop.f32.mrb[18].mxu0 }
 0x1e3   : > { %v2224_v28 = vadd.f32 %v2904_v4, %v3917_v53  ;;  %v2906_v9 = vadd.f32 %v2877_v37, %v2757_v10  ;;  %v2765_v0 = vpop.f32.mrb[26].mxu1  ;;  %v2127_v20 = vpop.f32.mrb[19].mxu0 }
 0x1e4   : > { %v2222_v58 = vadd.f32 %v2905_v32, %v3917_v53  ;;  %v2907_v61 = vadd.f32 %v2127_v20, %v1283_v5  ;;  %v1315_v23 = vpop.f32.mrb[27].mxu1 }
 0x1e5   : > { %2252 = vst [vmem:[%s3921_s6 + $0x90] sm:$0xff] %v2224_v28  ;;  %v2225_v17 = vadd.f32 %v2906_v9, %v3917_v53 }
 0x1e6   : > { %2250 = vst [vmem:[%s3921_s6 + $0x80] sm:$0xff] %v2222_v58  ;;  %v2223_v44 = vadd.f32 %v2907_v61, %v3917_v53 }
 0x1e7   : > { %2253 = vst [vmem:[%s3921_s6 + $0x98] sm:$0xff] %v2225_v17 }
 0x1e8   : > { %2251 = vst [vmem:[%s3921_s6 + $0x88] sm:$0xff] %v2223_v44  ;;  %v2880_v30 = vpop.f32.mrb[20].mxu0 }
 0x1e9   : > { %v2908_v33 = vadd.f32 %v2880_v30, %v2760_v54  ;;  %v2140_v36 = vpop.f32.mrb[21].mxu0 }
 0x1ea   : > { %v2909_v35 = vadd.f32 %v2140_v36, %v1296_v27  ;;  %v2881_v50 = vpop.f32.mrb[22].mxu0 }
 0x1eb   : > { %v2228_v38 = vadd.f32 %v2908_v33, %v3917_v53  ;;  %v2910_v39 = vadd.f32 %v2881_v50, %v2761_v12  ;;  %v2143_v41 = vpop.f32.mrb[23].mxu0 }
 0x1ec   : > { %v2226_v43 = vadd.f32 %v2909_v35, %v3917_v53  ;;  %v2911_v48 = vadd.f32 %v2143_v41, %v1299_v26 }
 0x1ed   : > { %2256 = vst [vmem:[%s3921_s6 + $0xb0] sm:$0xff] %v2228_v38  ;;  %v2229_v14 = vadd.f32 %v2910_v39, %v3917_v53 }
 0x1ee   : > { %2254 = vst [vmem:[%s3921_s6 + $0xa0] sm:$0xff] %v2226_v43  ;;  %v2227_v62 = vadd.f32 %v2911_v48, %v3917_v53 }
 0x1ef   : > { %2257 = vst [vmem:[%s3921_s6 + $0xb8] sm:$0xff] %v2229_v14 }
 0x1f0   : > { %2255 = vst [vmem:[%s3921_s6 + $0xa8] sm:$0xff] %v2227_v62  ;;  %v2884_v11 = vpop.f32.mrb[24].mxu0 }
 0x1f1   : > { %v2912_v47 = vadd.f32 %v2884_v11, %v2764_v8  ;;  %v2156_v22 = vpop.f32.mrb[25].mxu0 }
 0x1f2   : > { %v2913_v49 = vadd.f32 %v2156_v22, %v1312_v15  ;;  %v2885_v34 = vpop.f32.mrb[26].mxu0 }
 0x1f3   : > { %v2232_v21 = vadd.f32 %v2912_v47, %v3917_v53  ;;  %v2914_v2 = vadd.f32 %v2885_v34, %v2765_v0  ;;  %v2159_v42 = vpop.f32.mrb[27].mxu0 }
 0x1f4   : > { %v2230_v13 = vadd.f32 %v2913_v49, %v3917_v53  ;;  %v2915_v51 = vadd.f32 %v2159_v42, %v1315_v23 }
 0x1f5   : > { %2260 = vst [vmem:[%s3921_s6 + $0xd0] sm:$0xff] %v2232_v21  ;;  %v2233_v46 = vadd.f32 %v2914_v2, %v3917_v53 }
 0x1f6   : > { %2258 = vst [vmem:[%s3921_s6 + $0xc0] sm:$0xff] %v2230_v13  ;;  %v2231_v57 = vadd.f32 %v2915_v51, %v3917_v53 }
 0x1f7   : > { %2261 = vst [vmem:[%s3921_s6 + $0xd8] sm:$0xff] %v2233_v46 }
 0x1f8   : > { %2259 = vst [vmem:[%s3921_s6 + $0xc8] sm:$0xff] %v2231_v57 }
 0x1f9   : > { %3179 = shalt.err (!%p3176_p3)
}
 0x1fa   : > { %s3180_s25 = scalar_lea.hbm %s3981_s16, 3584  ;;  %s3184_s28 = scalar_lea.hbm %s4035_s3, 7168 }
 0x1fb   : > { %p3181_p4 = scmp.ne.s32.totalorder %s3981_s16, %s3180_s25  ;;  %p3185_p9 = scmp.lt.u32.totalorder %s3981_s16, %s4035_s3 }
 0x1fc   : > { %p3186_p10 = scmp.lt.u32.totalorder %s3184_s28, %s3180_s25  ;;  %p3188_p12 = scmp.lt.u32.totalorder %s3180_s25, %s3981_s16 }
 0x1fd   : > { %p3182_p7 = pnand %p3181_p4, %p3291_p5 }
 0x1fe   : > { %p3187_p11 = por %p3186_p10, %p3185_p9 }
 0x1ff   : > { %p3183_p8 = pneg %p3182_p7 }
 0x200   : > { %p3189_p13 = por %p3188_p12, %p3187_p11 }
 0x202   : > { %p3190_p0 = pnand %p3189_p13, %p3183_p8 }
 0x204   : > { %3193 = shalt.err (!%p3190_p0)
}
 0x205   : > { %s3231_s4 = smov 128   ;;  %s3232_s5 = smov 8  }
 0x206   : > { %3125 = dma.vmem_to_hbm [thread:$0]  (%p3291_p5), %s3983_s8, 3584, %s3981_s16, %s3991_s11, %s3231_s4, %s3231_s4, %s3232_s5  }
 0x207 PF: > { %p3131_p1 = scmp.ge.s32.totalorder %s3228_s15, 2  ;;  %s2291_s6 = sand.u32 1, %s3216_s12  }
 0x208   : > { %s2292_s7 = scalar_lea.sflag [#allocation3], %s2291_s6 }
 0x209   : > { %p3128_p2 = pnand %p3131_p1, %p3295_p6 }
 0x20b   : > { %3211 = dma.done.wait (!%p3128_p2), %s2292_s7, 3584  }
 0x20c   : > { %3213 = vsyncadd (!%p3128_p2), %s2292_s7, 4294963712  ;;  %p13_p3 = scmp.ge.s32.totalorder %s3278_s18, 4   ;;  %s4038_s12 = smov %s3220_s13 }
 0x20d   : > { %s4039_s13 = smov %s3224_s14  ;;  %s4040_s14 = smov %s3289_s21 }
 0x20e   : > { %s4041_s15 = smov %s3278_s18  ;;  %15 = sbr.rel (!%p13_p3) target bundleno = 3 (0x3), region = 75 }
 0x215   :  { %2297 = vsyncpa [#allocation3], 1 }
 0x216   :  { %2299 = vsyncpa [#allocation3 + $0x1], 1 }

</bundles_post_ra>
